<compile_context>
chip_gen: v7x
topology: tpu7x:2x2x1
jax: 0.10.0
libtpu: 0.0.40
codegen_flags: <defaults>
</compile_context>

<pallas_src>
import functools

import jax
import jax.numpy as jnp
import numpy as np
from jax.experimental import pallas as pl
from jax.experimental.pallas import tpu as pltpu


def _transition_kernel(x_ref, sb_ref, w_ref, p_ref, o_ref, *, n_rows, two_w, wh):
    """One (image, row-tile) grid step.

    x_ref:  (1, C, n_rows*two_w)  n_rows pooled rows; two_w = 2*W = two
                                  consecutive image rows flattened on lanes.
    sb_ref: (C, 2) f32            [:,0] = 0.25*gamma/sqrt(var+eps)
                                  [:,1] = 0.25*(beta - mean*gamma/sqrt(var+eps))
    w_ref:  (Cout, C)             1x1 conv weight (matmul dtype).
    p_ref:  (two_w, wh)           2x2 avg-pool matrix (4 ones per column).
    o_ref:  (1, Cout, n_rows*wh)
    """
    c = sb_ref.shape[0]
    md = w_ref.dtype
    w = w_ref[...]
    p = p_ref[...]
    # Hoist the lane-broadcast of the folded BN constants out of the row loop
    # (JAX does not CSE broadcast_in_dim inside loops).  Elementwise math stays
    # in f32: accurate on all gens, and the VPU has slack in this HBM-bound op.
    s_bc = jnp.broadcast_to(sb_ref[:, 0:1], (c, two_w))
    b_bc = jnp.broadcast_to(sb_ref[:, 1:2], (c, two_w))
    for t in range(n_rows):                      # static unroll over pooled rows
        r = x_ref[0, :, t * two_w:(t + 1) * two_w]             # (C, 2W)
        z = jnp.maximum(r.astype(jnp.float32) * s_bc + b_bc, 0.0)
        # 2x2 avg-pool first (pooling commutes with the 1x1 conv; the 0.25 is
        # folded into s/b, valid through relu since 0.25 > 0) -> (C, Wh).
        pooled = jnp.dot(z.astype(md), p, preferred_element_type=jnp.float32)
        # 1x1 conv: one MXU matmul contracting channels -> (Cout, Wh).
        y = jnp.dot(w, pooled.astype(md), preferred_element_type=jnp.float32)
        o_ref[0, :, t * wh:(t + 1) * wh] = y.astype(o_ref.dtype)


def _row_tile_candidates(hh, w):
    """Row-tile sizes t (pooled rows per block) keeping both block last dims
    (8,128)-legal: input lane dim t*2*w and output lane dim t*(w//2) must each
    be a multiple of 128 or cover the full array dim (t == hh)."""
    wh = w // 2
    cands = []
    for t in range(1, hh + 1):
        if hh % t:
            continue
        in_ok = (t == hh) or ((t * 2 * w) % 128 == 0)
        out_ok = (t == hh) or ((t * wh) % 128 == 0)
        if in_ok and out_ok:
            cands.append(t)
    return cands                                  # t == hh is always present


def _pick_row_tile(hh, w, c, itemsize, budget_bytes, prefer_split):
    cands = _row_tile_candidates(hh, w)
    fits = [t for t in cands if c * t * 2 * w * itemsize <= budget_bytes]
    if not fits:
        return min(cands)             # correctness over budget
    if prefer_split:                  # N == 1: leave >=2 row tiles for 2 TCs
        split = [t for t in fits if hh // t >= 2]
        if split:
            return max(split)
    return max(fits)


@functools.partial(jax.jit, static_argnames=("eps", "matmul_dtype"))
def transition_forward(x_nchw, gamma, beta, running_mean, running_var,
                       conv_weight, eps=1e-5, matmul_dtype=jnp.float32):
    """x_nchw: (N, C, H, W). conv_weight: (Cout, C, 1, 1). Returns NCHW."""
    N, C, H, W = x_nchw.shape
    Cout = conv_weight.shape[0]
    Hh, Wh = H // 2, W // 2
    P = Hh * Wh
    md = jnp.dtype(matmul_dtype)
    out_dtype = x_nchw.dtype

    # PyTorch avg_pool2d(2) floors odd spatial dims; the 1x1 conv is pointwise,
    # so cropping before it is equivalent (no-op when H, W are even).
    x_nchw = x_nchw[:, :, :2 * Hh, :2 * Wh]
    Wc = 2 * Wh                       # cropped width
    two_w = 2 * Wc                    # two consecutive image rows, flattened

    # bf16 activations when running bf16 matmuls: halves HBM input traffic.
    # (Inside a full network the producer should emit bf16 so the cast fuses.)
    if md == jnp.dtype(jnp.bfloat16) and x_nchw.dtype != jnp.bfloat16:
        x_nchw = x_nchw.astype(jnp.bfloat16)

    # Free minor-dim reshape of the contiguous NCHW buffer: no extra HBM pass.
    x_flat = x_nchw.reshape(N, C, 2 * Hh * Wc)

    # Fold BN running stats (inference) and the 0.25 pooling weight into one
    # packed f32 (C, 2) scale/bias operand (kept f32 for accuracy).
    scale = gamma / jnp.sqrt(running_var + eps)
    bias = beta - running_mean * scale
    sb = jnp.stack([0.25 * scale, 0.25 * bias], axis=1).astype(jnp.float32)

    w2 = conv_weight[:, :, 0, 0].astype(md)                     # (Cout, C)

    # Constant 2x2 avg-pool matrix over two flattened image rows: column wh
    # sums lanes {2wh, 2wh+1, Wc+2wh, Wc+2wh+1}.  Tiny; built at trace time.
    cols = np.arange(Wh)
    pool_np = np.zeros((two_w, Wh), dtype=np.float32)
    pool_np[2 * cols, cols] = 1.0
    pool_np[2 * cols + 1, cols] = 1.0
    pool_np[Wc + 2 * cols, cols] = 1.0
    pool_np[Wc + 2 * cols + 1, cols] = 1.0
    pool = jnp.asarray(pool_np, dtype=md)

    # Generation-aware VMEM budgeting (v7x: 64 MiB, v5e/v6e: 128 MiB).
    try:
        vmem_cap = int(getattr(pltpu.get_tpu_info(), "vmem_capacity_bytes",
                               128 << 20))
    except Exception:
        vmem_cap = 128 << 20
    itemsize = jnp.dtype(x_flat.dtype).itemsize
    x_budget = max(1 << 20, min(12 << 20, vmem_cap // 12))

    th = _pick_row_tile(Hh, Wc, C, itemsize, x_budget, prefer_split=(N == 1))
    blk_in = th * two_w
    blk_out = th * Wh
    grid = (N, Hh // th)

    # Explicit VMEM limit: double-buffered x/out blocks + constants + slack,
    # clamped to ~3/4 of physical VMEM, never below what is actually needed.
    x_block_bytes = C * blk_in * itemsize
    o_block_bytes = Cout * blk_out * jnp.dtype(out_dtype).itemsize
    const_bytes = (Cout * C + two_w * Wh) * md.itemsize + C * 2 * 4
    need = 2 * (x_block_bytes + o_block_bytes + const_bytes) + (2 << 20)
    vmem_target = min(int(vmem_cap * 3 // 4), 96 << 20)
    vmem_limit = int(min(max(need, 16 << 20), max(vmem_target, need)))

    cost = pl.CostEstimate(
        flops=int(2 * N * P * C * Cout + 2 * N * Hh * C * two_w * Wh),
        transcendentals=0,
        bytes_accessed=int(x_flat.size * itemsize
                           + N * Cout * P * jnp.dtype(out_dtype).itemsize
                           + (Cout * C + two_w * Wh) * md.itemsize
                           + C * 2 * 4),
    )

    kernel = functools.partial(_transition_kernel,
                               n_rows=th, two_w=two_w, wh=Wh)

    out_flat = pl.pallas_call(
        kernel,
        out_shape=jax.ShapeDtypeStruct((N, Cout, P), out_dtype),
        grid_spec=pltpu.PrefetchScalarGridSpec(
            num_scalar_prefetch=0,
            grid=grid,
            in_specs=[
                pl.BlockSpec((1, C, blk_in), lambda n, r: (n, 0, r)),
                pl.BlockSpec((C, 2), lambda n, r: (0, 0)),
                pl.BlockSpec((Cout, C), lambda n, r: (0, 0)),
                pl.BlockSpec((two_w, Wh), lambda n, r: (0, 0)),
            ],
            out_specs=pl.BlockSpec((1, Cout, blk_out), lambda n, r: (n, 0, r)),
        ),
        compiler_params=pltpu.CompilerParams(
            dimension_semantics=("parallel", "parallel"),
            vmem_limit_bytes=vmem_limit),
        cost_estimate=cost,
    )(x_flat, sb, w2, pool)

    # (N, Cout, Hh*Wh) -> NCHW: free minor-dim reshape, no output transpose.
    return out_flat.reshape(N, Cout, Hh, Wh)


def _reference(x_nchw, gamma, beta, running_mean, running_var, conv_weight,
               eps=1e-5):
    # Pure-JAX reference of the same inference-mode forward.
    scale = (gamma / jnp.sqrt(running_var + eps)).reshape(1, -1, 1, 1)
    bias = (beta - running_mean * gamma / jnp.sqrt(running_var + eps)
            ).reshape(1, -1, 1, 1)
    y = jnp.maximum(x_nchw * scale + bias, 0.0)
    w = conv_weight[:, :, 0, 0]                                 # (Cout, C)
    conv = jnp.einsum("nchw,oc->nohw", y, w)
    N, Co, H, W = conv.shape
    pooled = conv.reshape(N, Co, H // 2, 2, W // 2, 2).mean(axis=(3, 5))
    return pooled


if __name__ == "__main__":
    key = jax.random.PRNGKey(0)
    N, C, H, W = 2, 8, 16, 16
    Cout = 4

    k1, k2, k3, k4, k5, k6 = jax.random.split(key, 6)
    x = jax.random.normal(k1, (N, C, H, W), dtype=jnp.float32)
    gamma = jax.random.uniform(k2, (C,), minval=0.5, maxval=1.5,
                               dtype=jnp.float32)
    beta = jax.random.normal(k3, (C,), dtype=jnp.float32) * 0.1
    running_mean = jax.random.normal(k4, (C,), dtype=jnp.float32) * 0.1
    running_var = jax.random.uniform(k5, (C,), minval=0.5, maxval=1.5,
                                     dtype=jnp.float32)
    conv_weight = jax.random.normal(k6, (Cout, C, 1, 1), dtype=jnp.float32) \
        * (1.0 / jnp.sqrt(C))

    ref = _reference(x, gamma, beta, running_mean, running_var, conv_weight)

    # f32 path: tight check against the reference.
    out = transition_forward(x, gamma, beta, running_mean, running_var,
                             conv_weight)
    out = jax.block_until_ready(out)
    assert out.shape == (N, Cout, H // 2, W // 2), out.shape
    np.testing.assert_allclose(np.asarray(out), np.asarray(ref),
                               rtol=1e-5, atol=1e-5)

    # bf16 activations + bf16 matmul inputs (v5e/v6e/v7x MXU rate, half the
    # HBM input traffic): looser tolerance.
    out_bf16 = transition_forward(x, gamma, beta, running_mean, running_var,
                                  conv_weight, matmul_dtype=jnp.bfloat16)
    out_bf16 = jax.block_until_ready(out_bf16)
    np.testing.assert_allclose(np.asarray(out_bf16), np.asarray(ref),
                               rtol=5e-2, atol=5e-2)

    print("KERNEL_OK")
</pallas_src>

<mosaic_0001>
module attributes {stable_mosaic.version = 11 : i64} {
  func.func @_transition_kernel(%arg0: i32, %arg1: i32, %arg2: memref<1x8x256xf32, #tpu.memory_space<vmem>>, %arg3: memref<8x2xf32, #tpu.memory_space<vmem>>, %arg4: memref<4x8xf32, #tpu.memory_space<vmem>>, %arg5: memref<32x8xf32, #tpu.memory_space<vmem>>, %arg6: memref<1x4x64xf32, #tpu.memory_space<vmem>>) attributes {dimension_semantics = [#tpu.dimension_semantics<parallel>, #tpu.dimension_semantics<parallel>], iteration_bounds = array<i64: 2, 1>, scalar_prefetch = 0 : i64, scratch_operands = 0 : i64, tpu.core_type = #tpu.core_type<tc>, window_params = [{transform_indices = @transform_0, window_bounds = array<i64: 1, 8, 256>}, {pipeline_mode = #tpu.pipeline_mode<synchronous>, transform_indices = @transform_1, window_bounds = array<i64: 8, 2>}, {pipeline_mode = #tpu.pipeline_mode<synchronous>, transform_indices = @transform_2, window_bounds = array<i64: 4, 8>}, {pipeline_mode = #tpu.pipeline_mode<synchronous>, transform_indices = @transform_3, window_bounds = array<i64: 32, 8>}, {transform_indices = @transform_4, window_bounds = array<i64: 1, 4, 64>}]} {
    %c0 = arith.constant 0 : index
    %c0_0 = arith.constant 0 : index
    %0 = vector.load %arg4[%c0, %c0_0] : memref<4x8xf32, #tpu.memory_space<vmem>>, vector<4x8xf32>
    %c0_1 = arith.constant 0 : index
    %c0_2 = arith.constant 0 : index
    %1 = vector.load %arg5[%c0_1, %c0_2] : memref<32x8xf32, #tpu.memory_space<vmem>>, vector<32x8xf32>
    %c0_3 = arith.constant 0 : index
    %c0_4 = arith.constant 0 : index
    %2 = vector.load %arg3[%c0_3, %c0_4] : memref<8x2xf32, #tpu.memory_space<vmem>>, vector<8x1xf32>
    %3 = vector.shape_cast %2 : vector<8x1xf32> to vector<8x1xf32>
    %4 = vector.broadcast %3 : vector<8x1xf32> to vector<8x32xf32>
    %c0_5 = arith.constant 0 : index
    %c1 = arith.constant 1 : index
    %5 = vector.load %arg3[%c0_5, %c1] : memref<8x2xf32, #tpu.memory_space<vmem>>, vector<8x1xf32>
    %6 = vector.shape_cast %5 : vector<8x1xf32> to vector<8x1xf32>
    %7 = vector.broadcast %6 : vector<8x1xf32> to vector<8x32xf32>
    %c0_6 = arith.constant 0 : index
    %c0_7 = arith.constant 0 : index
    %c0_8 = arith.constant 0 : index
    %8 = vector.load %arg2[%c0_6, %c0_7, %c0_8] : memref<1x8x256xf32, #tpu.memory_space<vmem>>, vector<1x8x32xf32>
    %9 = vector.shape_cast %8 : vector<1x8x32xf32> to vector<8x32xf32>
    %10 = arith.mulf %9, %4 : vector<8x32xf32>
    %11 = arith.addf %10, %7 : vector<8x32xf32>
    %cst = arith.constant 0.000000e+00 : f32
    %12 = vector.broadcast %cst : f32 to vector<8x32xf32>
    %13 = arith.maximumf %11, %12 : vector<8x32xf32>
    %cst_9 = arith.constant dense<0.000000e+00> : vector<8x8xf32>
    %14 = tpu.matmul %13, %1, %cst_9 {dimension_numbers = #tpu.dot_dimension_numbers<[1], [0], [0], [1], [0, 0, 1, 1], [], []>} : vector<8x32xf32>, vector<32x8xf32>, vector<8x8xf32> -> vector<8x8xf32>
    %cst_10 = arith.constant dense<0.000000e+00> : vector<4x8xf32>
    %15 = tpu.matmul %0, %14, %cst_10 {dimension_numbers = #tpu.dot_dimension_numbers<[1], [0], [0], [1], [0, 0, 1, 1], [], []>} : vector<4x8xf32>, vector<8x8xf32>, vector<4x8xf32> -> vector<4x8xf32>
    %c0_11 = arith.constant 0 : index
    %c0_12 = arith.constant 0 : index
    %c0_13 = arith.constant 0 : index
    %16 = vector.load %arg6[%c0_11, %c0_12, %c0_13] : memref<1x4x64xf32, #tpu.memory_space<vmem>>, vector<1x4x8xf32>
    %17 = vector.shape_cast %16 : vector<1x4x8xf32> to vector<4x8xf32>
    %18 = vector.shape_cast %15 : vector<4x8xf32> to vector<1x4x8xf32>
    tpu.vector_store %arg6[%c0_11, %c0_12, %c0_13], %18 {strides = array<i32>} : memref<1x4x64xf32, #tpu.memory_space<vmem>>, vector<1x4x8xf32>,
    %c0_14 = arith.constant 0 : index
    %c0_15 = arith.constant 0 : index
    %c32 = arith.constant 32 : index
    %19 = vector.load %arg2[%c0_14, %c0_15, %c32] : memref<1x8x256xf32, #tpu.memory_space<vmem>>, vector<1x8x32xf32>
    %20 = vector.shape_cast %19 : vector<1x8x32xf32> to vector<8x32xf32>
    %21 = arith.mulf %20, %4 : vector<8x32xf32>
    %22 = arith.addf %21, %7 : vector<8x32xf32>
    %cst_16 = arith.constant 0.000000e+00 : f32
    %23 = vector.broadcast %cst_16 : f32 to vector<8x32xf32>
    %24 = arith.maximumf %22, %23 : vector<8x32xf32>
    %cst_17 = arith.constant dense<0.000000e+00> : vector<8x8xf32>
    %25 = tpu.matmul %24, %1, %cst_17 {dimension_numbers = #tpu.dot_dimension_numbers<[1], [0], [0], [1], [0, 0, 1, 1], [], []>} : vector<8x32xf32>, vector<32x8xf32>, vector<8x8xf32> -> vector<8x8xf32>
    %cst_18 = arith.constant dense<0.000000e+00> : vector<4x8xf32>
    %26 = tpu.matmul %0, %25, %cst_18 {dimension_numbers = #tpu.dot_dimension_numbers<[1], [0], [0], [1], [0, 0, 1, 1], [], []>} : vector<4x8xf32>, vector<8x8xf32>, vector<4x8xf32> -> vector<4x8xf32>
    %c0_19 = arith.constant 0 : index
    %c0_20 = arith.constant 0 : index
    %c8 = arith.constant 8 : index
    %27 = vector.load %arg6[%c0_19, %c0_20, %c8] : memref<1x4x64xf32, #tpu.memory_space<vmem>>, vector<1x4x8xf32>
    %28 = vector.shape_cast %27 : vector<1x4x8xf32> to vector<4x8xf32>
    %29 = vector.shape_cast %26 : vector<4x8xf32> to vector<1x4x8xf32>
    tpu.vector_store %arg6[%c0_19, %c0_20, %c8], %29 {strides = array<i32>} : memref<1x4x64xf32, #tpu.memory_space<vmem>>, vector<1x4x8xf32>,
    %c0_21 = arith.constant 0 : index
    %c0_22 = arith.constant 0 : index
    %c64 = arith.constant 64 : index
    %30 = vector.load %arg2[%c0_21, %c0_22, %c64] : memref<1x8x256xf32, #tpu.memory_space<vmem>>, vector<1x8x32xf32>
    %31 = vector.shape_cast %30 : vector<1x8x32xf32> to vector<8x32xf32>
    %32 = arith.mulf %31, %4 : vector<8x32xf32>
    %33 = arith.addf %32, %7 : vector<8x32xf32>
    %cst_23 = arith.constant 0.000000e+00 : f32
    %34 = vector.broadcast %cst_23 : f32 to vector<8x32xf32>
    %35 = arith.maximumf %33, %34 : vector<8x32xf32>
    %cst_24 = arith.constant dense<0.000000e+00> : vector<8x8xf32>
    %36 = tpu.matmul %35, %1, %cst_24 {dimension_numbers = #tpu.dot_dimension_numbers<[1], [0], [0], [1], [0, 0, 1, 1], [], []>} : vector<8x32xf32>, vector<32x8xf32>, vector<8x8xf32> -> vector<8x8xf32>
    %cst_25 = arith.constant dense<0.000000e+00> : vector<4x8xf32>
    %37 = tpu.matmul %0, %36, %cst_25 {dimension_numbers = #tpu.dot_dimension_numbers<[1], [0], [0], [1], [0, 0, 1, 1], [], []>} : vector<4x8xf32>, vector<8x8xf32>, vector<4x8xf32> -> vector<4x8xf32>
    %c0_26 = arith.constant 0 : index
    %c0_27 = arith.constant 0 : index
    %c16 = arith.constant 16 : index
    %38 = vector.load %arg6[%c0_26, %c0_27, %c16] : memref<1x4x64xf32, #tpu.memory_space<vmem>>, vector<1x4x8xf32>
    %39 = vector.shape_cast %38 : vector<1x4x8xf32> to vector<4x8xf32>
    %40 = vector.shape_cast %37 : vector<4x8xf32> to vector<1x4x8xf32>
    tpu.vector_store %arg6[%c0_26, %c0_27, %c16], %40 {strides = array<i32>} : memref<1x4x64xf32, #tpu.memory_space<vmem>>, vector<1x4x8xf32>,
    %c0_28 = arith.constant 0 : index
    %c0_29 = arith.constant 0 : index
    %c96 = arith.constant 96 : index
    %41 = vector.load %arg2[%c0_28, %c0_29, %c96] : memref<1x8x256xf32, #tpu.memory_space<vmem>>, vector<1x8x32xf32>
    %42 = vector.shape_cast %41 : vector<1x8x32xf32> to vector<8x32xf32>
    %43 = arith.mulf %42, %4 : vector<8x32xf32>
    %44 = arith.addf %43, %7 : vector<8x32xf32>
    %cst_30 = arith.constant 0.000000e+00 : f32
    %45 = vector.broadcast %cst_30 : f32 to vector<8x32xf32>
    %46 = arith.maximumf %44, %45 : vector<8x32xf32>
    %cst_31 = arith.constant dense<0.000000e+00> : vector<8x8xf32>
    %47 = tpu.matmul %46, %1, %cst_31 {dimension_numbers = #tpu.dot_dimension_numbers<[1], [0], [0], [1], [0, 0, 1, 1], [], []>} : vector<8x32xf32>, vector<32x8xf32>, vector<8x8xf32> -> vector<8x8xf32>
    %cst_32 = arith.constant dense<0.000000e+00> : vector<4x8xf32>
    %48 = tpu.matmul %0, %47, %cst_32 {dimension_numbers = #tpu.dot_dimension_numbers<[1], [0], [0], [1], [0, 0, 1, 1], [], []>} : vector<4x8xf32>, vector<8x8xf32>, vector<4x8xf32> -> vector<4x8xf32>
    %c0_33 = arith.constant 0 : index
    %c0_34 = arith.constant 0 : index
    %c24 = arith.constant 24 : index
    %49 = vector.load %arg6[%c0_33, %c0_34, %c24] : memref<1x4x64xf32, #tpu.memory_space<vmem>>, vector<1x4x8xf32>
    %50 = vector.shape_cast %49 : vector<1x4x8xf32> to vector<4x8xf32>
    %51 = vector.shape_cast %48 : vector<4x8xf32> to vector<1x4x8xf32>
    tpu.vector_store %arg6[%c0_33, %c0_34, %c24], %51 {strides = array<i32>} : memref<1x4x64xf32, #tpu.memory_space<vmem>>, vector<1x4x8xf32>,
    %c0_35 = arith.constant 0 : index
    %c0_36 = arith.constant 0 : index
    %c128 = arith.constant 128 : index
    %52 = vector.load %arg2[%c0_35, %c0_36, %c128] : memref<1x8x256xf32, #tpu.memory_space<vmem>>, vector<1x8x32xf32>
    %53 = vector.shape_cast %52 : vector<1x8x32xf32> to vector<8x32xf32>
    %54 = arith.mulf %53, %4 : vector<8x32xf32>
    %55 = arith.addf %54, %7 : vector<8x32xf32>
    %cst_37 = arith.constant 0.000000e+00 : f32
    %56 = vector.broadcast %cst_37 : f32 to vector<8x32xf32>
    %57 = arith.maximumf %55, %56 : vector<8x32xf32>
    %cst_38 = arith.constant dense<0.000000e+00> : vector<8x8xf32>
    %58 = tpu.matmul %57, %1, %cst_38 {dimension_numbers = #tpu.dot_dimension_numbers<[1], [0], [0], [1], [0, 0, 1, 1], [], []>} : vector<8x32xf32>, vector<32x8xf32>, vector<8x8xf32> -> vector<8x8xf32>
    %cst_39 = arith.constant dense<0.000000e+00> : vector<4x8xf32>
    %59 = tpu.matmul %0, %58, %cst_39 {dimension_numbers = #tpu.dot_dimension_numbers<[1], [0], [0], [1], [0, 0, 1, 1], [], []>} : vector<4x8xf32>, vector<8x8xf32>, vector<4x8xf32> -> vector<4x8xf32>
    %c0_40 = arith.constant 0 : index
    %c0_41 = arith.constant 0 : index
    %c32_42 = arith.constant 32 : index
    %60 = vector.load %arg6[%c0_40, %c0_41, %c32_42] : memref<1x4x64xf32, #tpu.memory_space<vmem>>, vector<1x4x8xf32>
    %61 = vector.shape_cast %60 : vector<1x4x8xf32> to vector<4x8xf32>
    %62 = vector.shape_cast %59 : vector<4x8xf32> to vector<1x4x8xf32>
    tpu.vector_store %arg6[%c0_40, %c0_41, %c32_42], %62 {strides = array<i32>} : memref<1x4x64xf32, #tpu.memory_space<vmem>>, vector<1x4x8xf32>,
    %c0_43 = arith.constant 0 : index
    %c0_44 = arith.constant 0 : index
    %c160 = arith.constant 160 : index
    %63 = vector.load %arg2[%c0_43, %c0_44, %c160] : memref<1x8x256xf32, #tpu.memory_space<vmem>>, vector<1x8x32xf32>
    %64 = vector.shape_cast %63 : vector<1x8x32xf32> to vector<8x32xf32>
    %65 = arith.mulf %64, %4 : vector<8x32xf32>
    %66 = arith.addf %65, %7 : vector<8x32xf32>
    %cst_45 = arith.constant 0.000000e+00 : f32
    %67 = vector.broadcast %cst_45 : f32 to vector<8x32xf32>
    %68 = arith.maximumf %66, %67 : vector<8x32xf32>
    %cst_46 = arith.constant dense<0.000000e+00> : vector<8x8xf32>
    %69 = tpu.matmul %68, %1, %cst_46 {dimension_numbers = #tpu.dot_dimension_numbers<[1], [0], [0], [1], [0, 0, 1, 1], [], []>} : vector<8x32xf32>, vector<32x8xf32>, vector<8x8xf32> -> vector<8x8xf32>
    %cst_47 = arith.constant dense<0.000000e+00> : vector<4x8xf32>
    %70 = tpu.matmul %0, %69, %cst_47 {dimension_numbers = #tpu.dot_dimension_numbers<[1], [0], [0], [1], [0, 0, 1, 1], [], []>} : vector<4x8xf32>, vector<8x8xf32>, vector<4x8xf32> -> vector<4x8xf32>
    %c0_48 = arith.constant 0 : index
    %c0_49 = arith.constant 0 : index
    %c40 = arith.constant 40 : index
    %71 = vector.load %arg6[%c0_48, %c0_49, %c40] : memref<1x4x64xf32, #tpu.memory_space<vmem>>, vector<1x4x8xf32>
    %72 = vector.shape_cast %71 : vector<1x4x8xf32> to vector<4x8xf32>
    %73 = vector.shape_cast %70 : vector<4x8xf32> to vector<1x4x8xf32>
    tpu.vector_store %arg6[%c0_48, %c0_49, %c40], %73 {strides = array<i32>} : memref<1x4x64xf32, #tpu.memory_space<vmem>>, vector<1x4x8xf32>,
    %c0_50 = arith.constant 0 : index
    %c0_51 = arith.constant 0 : index
    %c192 = arith.constant 192 : index
    %74 = vector.load %arg2[%c0_50, %c0_51, %c192] : memref<1x8x256xf32, #tpu.memory_space<vmem>>, vector<1x8x32xf32>
    %75 = vector.shape_cast %74 : vector<1x8x32xf32> to vector<8x32xf32>
    %76 = arith.mulf %75, %4 : vector<8x32xf32>
    %77 = arith.addf %76, %7 : vector<8x32xf32>
    %cst_52 = arith.constant 0.000000e+00 : f32
    %78 = vector.broadcast %cst_52 : f32 to vector<8x32xf32>
    %79 = arith.maximumf %77, %78 : vector<8x32xf32>
    %cst_53 = arith.constant dense<0.000000e+00> : vector<8x8xf32>
    %80 = tpu.matmul %79, %1, %cst_53 {dimension_numbers = #tpu.dot_dimension_numbers<[1], [0], [0], [1], [0, 0, 1, 1], [], []>} : vector<8x32xf32>, vector<32x8xf32>, vector<8x8xf32> -> vector<8x8xf32>
    %cst_54 = arith.constant dense<0.000000e+00> : vector<4x8xf32>
    %81 = tpu.matmul %0, %80, %cst_54 {dimension_numbers = #tpu.dot_dimension_numbers<[1], [0], [0], [1], [0, 0, 1, 1], [], []>} : vector<4x8xf32>, vector<8x8xf32>, vector<4x8xf32> -> vector<4x8xf32>
    %c0_55 = arith.constant 0 : index
    %c0_56 = arith.constant 0 : index
    %c48 = arith.constant 48 : index
    %82 = vector.load %arg6[%c0_55, %c0_56, %c48] : memref<1x4x64xf32, #tpu.memory_space<vmem>>, vector<1x4x8xf32>
    %83 = vector.shape_cast %82 : vector<1x4x8xf32> to vector<4x8xf32>
    %84 = vector.shape_cast %81 : vector<4x8xf32> to vector<1x4x8xf32>
    tpu.vector_store %arg6[%c0_55, %c0_56, %c48], %84 {strides = array<i32>} : memref<1x4x64xf32, #tpu.memory_space<vmem>>, vector<1x4x8xf32>,
    %c0_57 = arith.constant 0 : index
    %c0_58 = arith.constant 0 : index
    %c224 = arith.constant 224 : index
    %85 = vector.load %arg2[%c0_57, %c0_58, %c224] : memref<1x8x256xf32, #tpu.memory_space<vmem>>, vector<1x8x32xf32>
    %86 = vector.shape_cast %85 : vector<1x8x32xf32> to vector<8x32xf32>
    %87 = arith.mulf %86, %4 : vector<8x32xf32>
    %88 = arith.addf %87, %7 : vector<8x32xf32>
    %cst_59 = arith.constant 0.000000e+00 : f32
    %89 = vector.broadcast %cst_59 : f32 to vector<8x32xf32>
    %90 = arith.maximumf %88, %89 : vector<8x32xf32>
    %cst_60 = arith.constant dense<0.000000e+00> : vector<8x8xf32>
    %91 = tpu.matmul %90, %1, %cst_60 {dimension_numbers = #tpu.dot_dimension_numbers<[1], [0], [0], [1], [0, 0, 1, 1], [], []>} : vector<8x32xf32>, vector<32x8xf32>, vector<8x8xf32> -> vector<8x8xf32>
    %cst_61 = arith.constant dense<0.000000e+00> : vector<4x8xf32>
    %92 = tpu.matmul %0, %91, %cst_61 {dimension_numbers = #tpu.dot_dimension_numbers<[1], [0], [0], [1], [0, 0, 1, 1], [], []>} : vector<4x8xf32>, vector<8x8xf32>, vector<4x8xf32> -> vector<4x8xf32>
    %c0_62 = arith.constant 0 : index
    %c0_63 = arith.constant 0 : index
    %c56 = arith.constant 56 : index
    %93 = vector.load %arg6[%c0_62, %c0_63, %c56] : memref<1x4x64xf32, #tpu.memory_space<vmem>>, vector<1x4x8xf32>
    %94 = vector.shape_cast %93 : vector<1x4x8xf32> to vector<4x8xf32>
    %95 = vector.shape_cast %92 : vector<4x8xf32> to vector<1x4x8xf32>
    tpu.vector_store %arg6[%c0_62, %c0_63, %c56], %95 {strides = array<i32>} : memref<1x4x64xf32, #tpu.memory_space<vmem>>, vector<1x4x8xf32>,
    return
  }
  func.func @transform_0(%arg0: i32, %arg1: i32) -> (i32, i32, i32) {
    %c0_i32 = arith.constant 0 : i32
    %c0_i32_0 = arith.constant 0 : i32
    return %arg0, %c0_i32, %arg1 : i32, i32, i32
  }
  func.func @transform_1(%arg0: i32, %arg1: i32) -> (i32, i32) {
    %c0_i32 = arith.constant 0 : i32
    %c0_i32_0 = arith.constant 0 : i32
    %c0_i32_1 = arith.constant 0 : i32
    return %c0_i32, %c0_i32_0 : i32, i32
  }
  func.func @transform_2(%arg0: i32, %arg1: i32) -> (i32, i32) {
    %c0_i32 = arith.constant 0 : i32
    %c0_i32_0 = arith.constant 0 : i32
    %c0_i32_1 = arith.constant 0 : i32
    return %c0_i32, %c0_i32_0 : i32, i32
  }
  func.func @transform_3(%arg0: i32, %arg1: i32) -> (i32, i32) {
    %c0_i32 = arith.constant 0 : i32
    %c0_i32_0 = arith.constant 0 : i32
    %c0_i32_1 = arith.constant 0 : i32
    return %c0_i32, %c0_i32_0 : i32, i32
  }
  func.func @transform_4(%arg0: i32, %arg1: i32) -> (i32, i32, i32) {
    %c0_i32 = arith.constant 0 : i32
    %c0_i32_0 = arith.constant 0 : i32
    return %arg0, %c0_i32, %arg1 : i32, i32, i32
  }
}

</mosaic_0001>

<bundles_post_ra>
// kernel: transition_forward.1
= control target key start
LH: loop header
LB: loop body
LE: loop exit
PB: predicated region body
PF: predicated region fallthrough
CT: control target
= control target key end

     0   :  { %s1923_s15 = smov 0   ;;  %s1925_s16 = smov 0   ;;  %s2103_s0 = inlined_call_operand.vmem [shape: f32[2,8,256], index: 0, kind: input, shape index: {}]   ;;  %s2104_s1 = inlined_call_operand.vmem [shape: f32[8,2], index: 1, kind: input, shape index: {}]   ;;  %s2105_s2 = inlined_call_operand.vmem [shape: f32[4,8], index: 2, kind: input, shape index: {}]   ;;  %s2106_s3 = inlined_call_operand.vmem [shape: f32[32,8], index: 3, kind: input, shape index: {}]   ;;  %s2107_s4 = inlined_call_operand.vmem [shape: f32[2,4,64], index: 4, kind: output, shape index: {}]  }
   0x1   :  { %s1927_s17 = smov 0  }
   0x2 LB: > { %s26_s18 = sadd.s32 1, %s1878_s16  ;;  %p1565_p0 = scmp.ge.s32.totalorder %s1882_s17, 1  ;;  %s1882_s17 = sphi %s1927_s17, %s14_s17   ;;  %s1878_s16 = sphi %s1925_s16, %s2109_s16   ;;  %s1874_s15 = sphi %s1923_s15, %s2108_s15  }
   0x3   : > { %p28_p1 = scmp.ge.s32.totalorder %s26_s18, 2  ;;  %p183_p2 = scmp.lt.s32.totalorder %s1882_s17, 3 }
   0x5   : > { %s2111_s18 = smov (%p28_p1, %s26_s18), 0  ;;  %p184_p3 = pnand %p1565_p0, %p183_p2 }
   0x6   : > { %v237_v0 = vld [vmem:[%s2104_s1] sm:$0xff] (!%p184_p3)  ;;  %v1884_v1 = vmov (!%p184_p3), 0   ;;  %v234_v3 = vld [vmem:[%s2106_s3 + $0x8] sm:$0xff] (!%p184_p3)  ;;  %v1885_v4 = vmov (!%p184_p3), 0.0|0.0   ;;  %v235_v6 = vld [vmem:[%s2106_s3 + $0x10] sm:$0xff] (!%p184_p3)  ;;  %v1886_v8 = vmov (!%p184_p3), 1  }
   0x7   : > { %187 = sbr.rel (%p184_p3) target bundleno = 2021 (0x7e5), region = 36  ;;  %1858 = vset.pattern.permute.xlu0 (!%p184_p3), %v1884_v1  ;;  %v233_v2 = vld [vmem:[%s2106_s3] sm:$0xff] (!%p184_p3)  ;;  %1772 = vmatprep.subr.bf16.mxu0 (!%p184_p3), %v1885_v4  ;;  %v236_v7 = vld [vmem:[%s2106_s3 + $0x18] sm:$0xff] (!%p184_p3)  ;;  %vm1887_vm0 = vmmov (!%p184_p3), 0   ;;  %v1888_v10 = vmov (!%p184_p3), 0.0   ;;  %p216_p4 = scmp.lt.s32.totalorder (!%p184_p3), %s1874_s15, 1 }
   0x8   : > { %240 = vperm.xlu0 (!%p184_p3), %1858, %v237_v0   ;;  %v1953_v5 = vpack.c.bf16 (!%p184_p3), %v234_v3, %v233_v2  ;;  %v1963_v9 = vpack.c.bf16 (!%p184_p3), %v236_v7, %v235_v6  ;;  %1652 = vmatprep.mubr.msk.f32.mxu0 (!%p184_p3), %vm1887_vm0, %v1888_v10  ;;  %vm251_vm1 = vcmask (!%p184_p3), 261120   ;;  %s1889_s7 = smov (!%p184_p3), 96   ;;  %s1890_s8 = smov (!%p184_p3), 32   ;;  %v1993_v21 = vld [vmem:[%s2105_s2] sm:$0xf] (!%p184_p3)  ;;  %vm325_vm2 = vcmask (!%p184_p3), 64512  }
   0x9   : > { %1655 = vmatprep.subr.mxu1 (!%p184_p3), %v1888_v10  ;;  %1657 = vmatprep.mubr.msk.f32.mxu1 (!%p184_p3), %vm1887_vm0, %v1888_v10  ;;  %s1891_s9 = smov (!%p184_p3), 64   ;;  %vm399_vm3 = vcmask (!%p184_p3), 60416   ;;  %s1893_s20 = smov (!%p184_p3), 16   ;;  %vm554_vm4 = vcmask (!%p184_p3), 126016   ;;  %vm709_vm5 = vcmask (!%p184_p3), 191616   ;;  %vm864_vm6 = vcmask (!%p184_p3), 257216  }
   0xa   : > { %1774 = vmatpush3.bf16.msra.mxu0 (!%p184_p3), %v1953_v5  ;;  %s1894_s21 = smov (!%p184_p3), 24   ;;  %vm1017_vm7 = vcmask (!%p184_p3), 322816   ;;  %s1895_s22 = smov (!%p184_p3), 40   ;;  %vm1172_vm8 = vcmask (!%p184_p3), 388416   ;;  %vm1327_vm9 = vcmask (!%p184_p3), 454016   ;;  %vm1482_vm10 = vcmask (!%p184_p3), 519616  }
   0xb   : > { %1775 = vmatprep.subr.bf16.mxu0 (!%p184_p3), %v1885_v4  ;;  %s1896_s23 = smov (!%p184_p3), 48   ;;  %s1897_s24 = smov (!%p184_p3), 56  }
   0xc   : > { %1859 = vset.pattern.permute.xlu0 (!%p184_p3), %v1886_v8 }
   0xd   : > { %244 = vperm.xlu0 (!%p184_p3), %1859, %v237_v0  }
   0xe   : > { %1777 = vmatpush3.bf16.msra.mxu0 %v1963_v9  ;;  %s2113_s15 = smov (!%p216_p4, %s1874_s15), 1 }
   0xf   : > { %1671 = vmatprep.subr.mxu0 %v1888_v10  ;;  %s1587_s29 = sshll.u32 %s2113_s15, 4  ;;  %s1568_s12 = sshll.u32 %s2113_s15, 2 }
  0x10   : > { %s223_s6 = scalar_lea.vmem %s2103_s0, %s1587_s29  ;;  %s2018_s19 = scalar_lea.vmem %s2107_s4, %s1568_s12 }
  0x11   : > { %v1019_v12 = vld [vmem:[%s223_s6 + $0x8] sm:$0xff]  ;;  %v401_v13 = vld [vmem:[%s223_s6] sm:$0xff]  ;;  %s1892_s15 = smov 8  }
  0x87   : > { %v241_v11 = vpop.permute.xlu0 %240 }
  0x88   : > { %v1020_v14 = vmul.f32 %v1019_v12, %v241_v11  ;;  %v402_v15 = vmul.f32 %v401_v13, %v241_v11 }
  0x8c   : > { %v245_v16 = vpop.permute.xlu0 %244 }
  0x8d   : > { %v1021_v17 = vadd.f32 %v1020_v14, %v245_v16  ;;  %v403_v18 = vadd.f32 %v402_v15, %v245_v16 }
  0x8f   : > { %v1980_v19 = vmax.f32 %v1021_v17, 0.0  ;;  %v404_v20 = vmax.f32 %v403_v18, 0.0 }
  0x91   : > { %1024 = vrot.lane.b32.xlu0 %v1980_v19, %s1889_s7  ;;  %406 = vrot.lane.b32.xlu1 %v404_v20, %s1889_s7 }
  0x92   : > { %1653 = vmatmul.mubr.msk.f32.vlgmr.msra.gmra.mrb[0].mxu0 %vm251_vm1, %v404_v20 }
  0x93   : > { %1673 = vmatprep.mubr.msk.f32.mxu0 %vm1887_vm0, %v1888_v10 }
  0x95   : > { %1334 = vrot.lane.b32.xlu0 %v1980_v19, %s1890_s8  ;;  %561 = vrot.lane.b32.xlu1 %v404_v20, %s1891_s9 }
  0x99   : > { %716 = vrot.lane.b32.xlu1 %v404_v20, %s1890_s8 }
  0x9d   : > { %1179 = vrot.lane.b32.xlu1 %v1980_v19, %s1891_s9 }
 0x103   : > { %v407_v24 = vpop.permute.xlu1 %406  ;;  %v1025_v40 = vpop.permute.xlu0 %1024 }
 0x107   : > { %v562_v25 = vpop.permute.xlu1 %561  ;;  %v1335_v42 = vpop.permute.xlu0 %1334 }
 0x10b   : > { %v717_v32 = vpop.permute.xlu1 %716 }
 0x10f   : > { %v1180_v39 = vpop.permute.xlu1 %1179 }
 0x165   : > { %v321_v22 = vpop.f32.mrb[0].mxu0 }
 0x166   : > { %v1654_v23 = vpop.f32.mrb[1].mxu0  ;;  %1656 = vmatpush3.msra.mxu1 %v321_v22 }
 0x167   : > { %1658 = vmatmul.mubr.msk.f32.vlgmr.msra.gmra.mrb[0].mxu1 %vm325_vm2, %v1993_v21  ;;  %1778 = vmatprep.subr.bf16.mxu1 %v1885_v4 }
 0x168   : > { %1780 = vmatpush3.bf16.msra.mxu1 %v1953_v5  ;;  %1668 = vmatprep.mubr.msk.f32.mxu1 %vm1887_vm0, %v1888_v10 }
 0x169   : > { %1781 = vmatprep.subr.bf16.mxu1 %v1885_v4 }
 0x16c   : > { %1783 = vmatpush3.bf16.msra.mxu1 %v1963_v9 }
 0x16d   : > { %1784 = vmatprep.subr.bf16.mxu1 %v1885_v4 }
 0x16f   : > { %1669 = vmatmul.mubr.msk.f32.vlgmr.msra.gmra.mrb[2].mxu1 %vm251_vm1, %v407_v24 }
 0x170   : > { %1786 = vmatpush3.bf16.msra.mxu1 %v1953_v5  ;;  %1684 = vmatprep.mubr.msk.f32.mxu1 %vm1887_vm0, %v1888_v10 }
 0x171   : > { %1787 = vmatprep.subr.bf16.mxu1 %v1885_v4 }
 0x174   : > { %1789 = vmatpush3.bf16.msra.mxu1 %v1963_v9 }
 0x175   : > { %1703 = vmatprep.subr.mxu1 %v1888_v10 }
 0x177   : > { %1685 = vmatmul.mubr.msk.f32.vlgmr.msra.gmra.mrb[4].mxu1 %vm251_vm1, %v562_v25 }
 0x178   : > { %1705 = vmatprep.mubr.msk.f32.mxu1 %vm1887_vm0, %v1888_v10 }
 0x23a   : > { %v395_v26 = vpop.f32.mrb[0].mxu1 }
 0x23b   : > { %400 = vst.msk [vmem:[%s2018_s19] sm:$0xf] %vm399_vm3, %v395_v26  ;;  %v1659_v27 = vpop.f32.mrb[1].mxu1 }
 0x242   : > { %v476_v28 = vpop.f32.mrb[2].mxu1 }
 0x243   : > { %v1670_v29 = vpop.f32.mrb[3].mxu1  ;;  %1672 = vmatpush3.msra.mxu0 %v476_v28 }
 0x244   : > { %1674 = vmatmul.mubr.msk.f32.vlgmr.msra.gmra.mrb[2].mxu0 %vm325_vm2, %v1993_v21  ;;  %1687 = vmatprep.subr.mxu0 %v1888_v10 }
 0x245   : > { %1689 = vmatprep.mubr.msk.f32.mxu0 %vm1887_vm0, %v1888_v10 }
 0x24a   : > { %v631_v30 = vpop.f32.mrb[4].mxu1 }
 0x24b   : > { %v1686_v31 = vpop.f32.mrb[5].mxu1  ;;  %1688 = vmatpush3.msra.mxu0 %v631_v30 }
 0x24c   : > { %1690 = vmatmul.mubr.msk.f32.vlgmr.msra.gmra.mrb[4].mxu0 %vm325_vm2, %v1993_v21  ;;  %1790 = vmatprep.subr.bf16.mxu0 %v1885_v4 }
 0x24d   : > { %1792 = vmatpush3.bf16.msra.mxu0 %v1953_v5  ;;  %1700 = vmatprep.mubr.msk.f32.mxu0 %vm1887_vm0, %v1888_v10 }
 0x24e   : > { %1793 = vmatprep.subr.bf16.mxu0 %v1885_v4 }
 0x251   : > { %1795 = vmatpush3.bf16.msra.mxu0 %v1963_v9 }
 0x252   : > { %1719 = vmatprep.subr.mxu0 %v1888_v10 }
 0x254   : > { %1701 = vmatmul.mubr.msk.f32.vlgmr.msra.gmra.mrb[6].mxu0 %vm251_vm1, %v717_v32 }
 0x255   : > { %1721 = vmatprep.mubr.msk.f32.mxu0 %vm1887_vm0, %v1888_v10 }
 0x317   : > { %v546_v33 = vpop.f32.mrb[2].mxu0 }
 0x318   : > { %v1675_v34 = vpop.f32.mrb[3].mxu0  ;;  %551 = vrot.lane.b32.xlu1 %v546_v33, %s1892_s15 }
 0x31f   : > { %v701_v35 = vpop.f32.mrb[4].mxu0 }
 0x320   : > { %v1691_v36 = vpop.f32.mrb[5].mxu0  ;;  %706 = vrot.lane.b32.xlu0 %v701_v35, %s1893_s20 }
 0x327   : > { %v786_v37 = vpop.f32.mrb[6].mxu0 }
 0x328   : > { %v1702_v38 = vpop.f32.mrb[7].mxu0  ;;  %1704 = vmatpush3.msra.mxu1 %v786_v37 }
 0x329   : > { %1706 = vmatmul.mubr.msk.f32.vlgmr.msra.gmra.mrb[6].mxu1 %vm325_vm2, %v1993_v21  ;;  %1796 = vmatprep.subr.bf16.mxu1 %v1885_v4 }
 0x32a   : > { %1798 = vmatpush3.bf16.msra.mxu1 %v1953_v5  ;;  %1716 = vmatprep.mubr.msk.f32.mxu1 %vm1887_vm0, %v1888_v10 }
 0x32b   : > { %1799 = vmatprep.subr.bf16.mxu1 %v1885_v4 }
 0x32e   : > { %1801 = vmatpush3.bf16.msra.mxu1 %v1963_v9 }
 0x32f   : > { %1735 = vmatprep.subr.mxu1 %v1888_v10 }
 0x331   : > { %1717 = vmatmul.mubr.msk.f32.vlgmr.msra.gmra.mrb[8].mxu1 %vm251_vm1, %v1980_v19 }
 0x332   : > { %1737 = vmatprep.mubr.msk.f32.mxu1 %vm1887_vm0, %v1888_v10 }
 0x38a   : > { %v552_v41 = vpop.permute.xlu1 %551 }
 0x38b   : > { %555 = vst.msk [vmem:[%s2018_s19] sm:$0xf] %vm554_vm4, %v552_v41 }
 0x392   : > { %v707_v43 = vpop.permute.xlu0 %706 }
 0x393   : > { %710 = vst.msk [vmem:[%s2018_s19] sm:$0xf] %vm709_vm5, %v707_v43 }
 0x3fc   : > { %v856_v44 = vpop.f32.mrb[6].mxu1 }
 0x3fd   : > { %v1707_v45 = vpop.f32.mrb[7].mxu1  ;;  %861 = vrot.lane.b32.xlu1 %v856_v44, %s1894_s21 }
 0x404   : > { %v939_v46 = vpop.f32.mrb[8].mxu1 }
 0x405   : > { %v1718_v47 = vpop.f32.mrb[9].mxu1  ;;  %1720 = vmatpush3.msra.mxu0 %v939_v46 }
 0x406   : > { %1722 = vmatmul.mubr.msk.f32.vlgmr.msra.gmra.mrb[8].mxu0 %vm325_vm2, %v1993_v21  ;;  %1802 = vmatprep.subr.bf16.mxu0 %v1885_v4 }
 0x407   : > { %1804 = vmatpush3.bf16.msra.mxu0 %v1953_v5  ;;  %1732 = vmatprep.mubr.msk.f32.mxu0 %vm1887_vm0, %v1888_v10 }
 0x408   : > { %1805 = vmatprep.subr.bf16.mxu0 %v1885_v4 }
 0x40b   : > { %1807 = vmatpush3.bf16.msra.mxu0 %v1963_v9 }
 0x40c   : > { %1751 = vmatprep.subr.mxu0 %v1888_v10 }
 0x40e   : > { %1733 = vmatmul.mubr.msk.f32.vlgmr.msra.gmra.mrb[10].mxu0 %vm251_vm1, %v1025_v40 }
 0x40f   : > { %1753 = vmatprep.mubr.msk.f32.mxu0 %vm1887_vm0, %v1888_v10 }
 0x46f   : > { %v862_v48 = vpop.permute.xlu1 %861 }
 0x470   : > { %865 = vst.msk [vmem:[%s2018_s19] sm:$0xf] %vm864_vm6, %v862_v48 }
 0x4d9   : > { %v1009_v49 = vpop.f32.mrb[8].mxu0 }
 0x4da   : > { %v1723_v50 = vpop.f32.mrb[9].mxu0  ;;  %1014 = vrot.lane.b32.xlu0 %v1009_v49, %s1890_s8 }
 0x4e1   : > { %v1094_v51 = vpop.f32.mrb[10].mxu0 }
 0x4e2   : > { %v1734_v52 = vpop.f32.mrb[11].mxu0  ;;  %1736 = vmatpush3.msra.mxu1 %v1094_v51 }
 0x4e3   : > { %1738 = vmatmul.mubr.msk.f32.vlgmr.msra.gmra.mrb[10].mxu1 %vm325_vm2, %v1993_v21  ;;  %1808 = vmatprep.subr.bf16.mxu1 %v1885_v4 }
 0x4e4   : > { %1810 = vmatpush3.bf16.msra.mxu1 %v1953_v5  ;;  %1748 = vmatprep.mubr.msk.f32.mxu1 %vm1887_vm0, %v1888_v10 }
 0x4e5   : > { %1811 = vmatprep.subr.bf16.mxu1 %v1885_v4 }
 0x4e8   : > { %1813 = vmatpush3.bf16.msra.mxu1 %v1963_v9 }
 0x4e9   : > { %1767 = vmatprep.subr.mxu1 %v1888_v10 }
 0x4eb   : > { %1749 = vmatmul.mubr.msk.f32.vlgmr.msra.gmra.mrb[12].mxu1 %vm251_vm1, %v1180_v39 }
 0x4ec   : > { %1769 = vmatprep.mubr.msk.f32.mxu1 %vm1887_vm0, %v1888_v10 }
 0x54c   : > { %v1015_v53 = vpop.permute.xlu0 %1014 }
 0x54d   : > { %1018 = vst.msk [vmem:[%s2018_s19] sm:$0xf] %vm1017_vm7, %v1015_v53 }
 0x5b6   : > { %v1164_v54 = vpop.f32.mrb[10].mxu1 }
 0x5b7   : > { %v1739_v55 = vpop.f32.mrb[11].mxu1  ;;  %1169 = vrot.lane.b32.xlu1 %v1164_v54, %s1895_s22 }
 0x5be   : > { %v1249_v56 = vpop.f32.mrb[12].mxu1 }
 0x5bf   : > { %v1750_v57 = vpop.f32.mrb[13].mxu1  ;;  %1752 = vmatpush3.msra.mxu0 %v1249_v56 }
 0x5c0   : > { %1754 = vmatmul.mubr.msk.f32.vlgmr.msra.gmra.mrb[12].mxu0 %vm325_vm2, %v1993_v21  ;;  %1814 = vmatprep.subr.bf16.mxu0 %v1885_v4 }
 0x5c1   : > { %1816 = vmatpush3.bf16.msra.mxu0 %v1953_v5  ;;  %1764 = vmatprep.mubr.msk.f32.mxu0 %vm1887_vm0, %v1888_v10 }
 0x5c2   : > { %1817 = vmatprep.subr.bf16.mxu0 %v1885_v4 }
 0x5c5   : > { %1819 = vmatpush3.bf16.msra.mxu0 %v1963_v9 }
 0x5c8   : > { %1765 = vmatmul.mubr.msk.f32.vlgmr.msra.gmra.mrb[14].mxu0 %vm251_vm1, %v1335_v42 }
 0x629   : > { %v1170_v58 = vpop.permute.xlu1 %1169 }
 0x62a   : > { %1173 = vst.msk [vmem:[%s2018_s19] sm:$0xf] %vm1172_vm8, %v1170_v58 }
 0x693   : > { %v1319_v59 = vpop.f32.mrb[12].mxu0 }
 0x694   : > { %v1755_v60 = vpop.f32.mrb[13].mxu0  ;;  %1324 = vrot.lane.b32.xlu0 %v1319_v59, %s1896_s23 }
 0x69b   : > { %v1404_v61 = vpop.f32.mrb[14].mxu0 }
 0x69c   : > { %v1766_v62 = vpop.f32.mrb[15].mxu0  ;;  %1768 = vmatpush3.msra.mxu1 %v1404_v61 }
 0x69d   : > { %1770 = vmatmul.mubr.msk.f32.vlgmr.msra.gmra.mrb[14].mxu1 %vm325_vm2, %v1993_v21 }
 0x706   : > { %v1325_v63 = vpop.permute.xlu0 %1324 }
 0x707   : > { %1328 = vst.msk [vmem:[%s2018_s19] sm:$0xf] %vm1327_vm9, %v1325_v63 }
 0x770   : > { %v1474_v0 = vpop.f32.mrb[14].mxu1 }
 0x771   : > { %v1771_v1 = vpop.f32.mrb[15].mxu1  ;;  %1479 = vrot.lane.b32.xlu1 %v1474_v0, %s1897_s24 }
 0x7e3   : > { %v1480_v2 = vpop.permute.xlu1 %1479 }
 0x7e4   : > { %1483 = vst.msk [vmem:[%s2018_s19] sm:$0xf] %vm1482_vm10, %v1480_v2 }
 0x7e5 PF: > { %s14_s17 = sadd.s32 1, %s1882_s17   ;;  %s2108_s15 = smov %s1878_s16 }
 0x7e6   : > { %p11_p5 = scmp.ge.s32.totalorder %s14_s17, 4   ;;  %s2109_s16 = smov %s2111_s18 }
 0x7e8   :  { %13 = sbr.rel (!%p11_p5) target bundleno = 2 (0x2), region = 66 }

</bundles_post_ra>
